<compile_context>
chip_gen: v7x
topology: tpu7x:2x2x1
jax: 0.10.0
libtpu: 0.0.40
codegen_flags: <defaults>
</compile_context>

<pallas_src>
from functools import partial

import jax
import jax.numpy as jnp
from jax.experimental import pallas as pl
from jax.experimental.pallas import tpu as pltpu


# ---------------------------------------------------------------------------
# Kernel 1: 1x1 conv (matmul) + per-channel sum / sum-of-squares accumulation.
# Outputs are grid-resident accumulators (constant index_map, "arbitrary").
# ---------------------------------------------------------------------------
def _conv_stats_kernel(x_ref, w_ref, sum_ref, ssq_ref):
    @pl.when(pl.program_id(0) == 0)
    def _():
        sum_ref[...] = jnp.zeros_like(sum_ref)
        ssq_ref[...] = jnp.zeros_like(ssq_ref)

    # (tm, C_in) @ (C_in, C_out) -> (tm, C_out), f32 accumulation on the MXU.
    y = jnp.dot(x_ref[...], w_ref[...], preferred_element_type=jnp.float32)
    sum_ref[...] += jnp.sum(y, axis=0, keepdims=True)
    ssq_ref[...] += jnp.sum(y * y, axis=0, keepdims=True)


# ---------------------------------------------------------------------------
# Kernel 2: recompute the 1x1 conv and apply BN (scale/shift folded in-kernel
# from the raw sum / sum-of-squares) + identity activation.
# ---------------------------------------------------------------------------
def _conv_bn_apply_kernel(
    x_ref, w_ref, sum_ref, ssq_ref, gamma_ref, beta_ref, o_ref, *, inv_m, eps
):
    y = jnp.dot(x_ref[...], w_ref[...], preferred_element_type=jnp.float32)

    mean = sum_ref[...] * inv_m                      # (1, C_out)
    var = ssq_ref[...] * inv_m - mean * mean         # biased variance (PyTorch BN)
    inv_std = jax.lax.rsqrt(var + eps)
    scale = gamma_ref[...] * inv_std
    shift = beta_ref[...] - mean * scale

    o_ref[...] = (y * scale + shift).astype(o_ref.dtype)


def _vmem_limit_bytes(tm, c_in, c_out):
    """Scoped-VMEM budget: double-buffered x/out tiles + resident operands.

    Capped at 48 MiB so the same setting is safe on v7x (64 MiB physical VMEM)
    as well as v5e/v6e (128 MiB)."""
    dt = 4  # f32
    per_step = 2 * tm * c_in * dt + 2 * tm * c_out * dt
    resident = c_in * c_out * dt + 6 * c_out * dt
    needed = per_step + resident
    return int(min(max(2 * needed, 32 * 1024 * 1024), 48 * 1024 * 1024))


# ---------------------------------------------------------------------------
# Wrapper
# ---------------------------------------------------------------------------
def conv2d_bn_forward(x_nchw, weight, gamma, beta, eps=1e-5, tm=512):
    """Conv2d(1x1, bias=False) -> BatchNorm2d (batch stats) -> Identity."""
    N, C_in, H, W = x_nchw.shape
    C_out = weight.shape[0]
    M = N * H * W

    # NCHW -> (M, C_in) with channels last (lane axis).
    # TODO(synk): if the caller can provide NHWC, this relayout (an extra HBM
    #             round trip of x / out) disappears entirely.
    x2d = jnp.transpose(x_nchw, (0, 2, 3, 1)).reshape(M, C_in)
    # Pre-transposed weight: (C_in, C_out) so the MXU consumes RHS as (K, N).
    w2d = jnp.transpose(weight.reshape(C_out, C_in), (1, 0))
    gamma2d = gamma.reshape(1, C_out).astype(jnp.float32)
    beta2d = beta.reshape(1, C_out).astype(jnp.float32)

    tm = min(tm, M)
    assert M % tm == 0, "spatial*batch size must divide the row tile"
    grid_m = M // tm
    vmem_bytes = _vmem_limit_bytes(tm, C_in, C_out)

    # --- pass 1: conv + BN statistics (reduction over N*H*W per channel) -----
    col_sum, col_ssq = pl.pallas_call(
        _conv_stats_kernel,
        out_shape=(
            jax.ShapeDtypeStruct((1, C_out), jnp.float32),
            jax.ShapeDtypeStruct((1, C_out), jnp.float32),
        ),
        grid_spec=pltpu.PrefetchScalarGridSpec(
            num_scalar_prefetch=0,
            grid=(grid_m,),
            in_specs=[
                pl.BlockSpec((tm, C_in), lambda i: (i, 0)),
                pl.BlockSpec((C_in, C_out), lambda i: (0, 0)),
            ],
            out_specs=[
                pl.BlockSpec((1, C_out), lambda i: (0, 0)),
                pl.BlockSpec((1, C_out), lambda i: (0, 0)),
            ],
        ),
        compiler_params=pltpu.CompilerParams(
            dimension_semantics=("arbitrary",),  # resident accumulators
            vmem_limit_bytes=vmem_bytes,
        ),
    )(x2d, w2d)

    # --- pass 2: conv recompute + BN apply (+ identity activation) -----------
    out2d = pl.pallas_call(
        partial(_conv_bn_apply_kernel, inv_m=1.0 / M, eps=float(eps)),
        out_shape=jax.ShapeDtypeStruct((M, C_out), jnp.float32),
        grid_spec=pltpu.PrefetchScalarGridSpec(
            num_scalar_prefetch=0,
            grid=(grid_m,),
            in_specs=[
                pl.BlockSpec((tm, C_in), lambda i: (i, 0)),
                pl.BlockSpec((C_in, C_out), lambda i: (0, 0)),
                pl.BlockSpec((1, C_out), lambda i: (0, 0)),
                pl.BlockSpec((1, C_out), lambda i: (0, 0)),
                pl.BlockSpec((1, C_out), lambda i: (0, 0)),
                pl.BlockSpec((1, C_out), lambda i: (0, 0)),
            ],
            out_specs=pl.BlockSpec((tm, C_out), lambda i: (i, 0)),
        ),
        compiler_params=pltpu.CompilerParams(
            dimension_semantics=("parallel",),  # shards row tiles across v7x TCs
            vmem_limit_bytes=vmem_bytes,
        ),
    )(x2d, w2d, col_sum, col_ssq, gamma2d, beta2d)

    # (M, C_out) -> NCHW
    return jnp.transpose(out2d.reshape(N, H, W, C_out), (0, 3, 1, 2))


def _reference(x_nchw, weight, gamma, beta, eps=1e-5):
    """Plain-JAX reference of the same forward (for a sanity check)."""
    N, C_in, H, W = x_nchw.shape
    C_out = weight.shape[0]
    x2d = jnp.transpose(x_nchw, (0, 2, 3, 1)).reshape(-1, C_in)
    y = x2d @ weight.reshape(C_out, C_in).T
    mean = jnp.mean(y, axis=0)
    var = jnp.mean((y - mean) ** 2, axis=0)
    y = (y - mean) / jnp.sqrt(var + eps) * gamma + beta
    return jnp.transpose(y.reshape(N, H, W, C_out), (0, 3, 1, 2))


if __name__ == "__main__":
    key = jax.random.PRNGKey(0)
    k_x, k_w = jax.random.split(key)

    N, C_in, C_out, H, W = 2, 4, 8, 16, 16

    x = jax.random.normal(k_x, (N, C_in, H, W), dtype=jnp.float32)

    # Conv weight init: normal(0, sqrt(2 / fan_out)), fan_out = kh*kw*out_ch = C_out
    w = jax.random.normal(k_w, (C_out, C_in, 1, 1), dtype=jnp.float32) * jnp.sqrt(
        2.0 / C_out
    )
    # BN affine params: weight init = 1, bias init = 0
    gamma = jnp.ones((C_out,), dtype=jnp.float32)
    beta = jnp.zeros((C_out,), dtype=jnp.float32)

    # tm=256 keeps grid_m=2 at this toy size so the resident-accumulator path
    # is actually exercised; for real shapes sweep tm in {512, 1024, 2048}.
    out = conv2d_bn_forward(x, w, gamma, beta, tm=256)
    out = jax.block_until_ready(out)

    ref = _reference(x, w, gamma, beta)
    assert out.shape == (N, C_out, H, W)
    assert jnp.allclose(out, ref, atol=1e-4, rtol=1e-4)

    print("KERNEL_OK")
</pallas_src>

<mosaic_0001>
module attributes {stable_mosaic.version = 11 : i64} {
  func.func @_conv_stats_kernel(%arg0: i32, %arg1: memref<256x4xf32, #tpu.memory_space<vmem>>, %arg2: memref<4x8xf32, #tpu.memory_space<vmem>>, %arg3: memref<1x8xf32, #tpu.memory_space<vmem>>, %arg4: memref<1x8xf32, #tpu.memory_space<vmem>>) attributes {dimension_semantics = [#tpu.dimension_semantics<arbitrary>], iteration_bounds = array<i64: 2>, scalar_prefetch = 0 : i64, scratch_operands = 0 : i64, tpu.core_type = #tpu.core_type<tc>, window_params = [{transform_indices = @transform_0, window_bounds = array<i64: 256, 4>}, {pipeline_mode = #tpu.pipeline_mode<synchronous>, transform_indices = @transform_1, window_bounds = array<i64: 4, 8>}, {pipeline_mode = #tpu.pipeline_mode<synchronous>, transform_indices = @transform_2, window_bounds = array<i64: 1, 8>}, {pipeline_mode = #tpu.pipeline_mode<synchronous>, transform_indices = @transform_3, window_bounds = array<i64: 1, 8>}]} {
    %c0_i32 = arith.constant 0 : i32
    %0 = arith.cmpi eq, %arg0, %c0_i32 : i32
    %1 = arith.extui %0 : i1 to i32
    %c0_i32_0 = arith.constant 0 : i32
    %2 = arith.cmpi ne, %1, %c0_i32_0 : i32
    scf.if %2 {
      %cst_14 = arith.constant 0.000000e+00 : f32
      %17 = vector.broadcast %cst_14 : f32 to vector<1x8xf32>
      %c0_15 = arith.constant 0 : index
      %c0_16 = arith.constant 0 : index
      %18 = vector.load %arg3[%c0_15, %c0_16] : memref<1x8xf32, #tpu.memory_space<vmem>>, vector<1x8xf32>
      tpu.vector_store %arg3[%c0_15, %c0_16], %17 {strides = array<i32>} : memref<1x8xf32, #tpu.memory_space<vmem>>, vector<1x8xf32>,
      %cst_17 = arith.constant 0.000000e+00 : f32
      %19 = vector.broadcast %cst_17 : f32 to vector<1x8xf32>
      %c0_18 = arith.constant 0 : index
      %c0_19 = arith.constant 0 : index
      %20 = vector.load %arg4[%c0_18, %c0_19] : memref<1x8xf32, #tpu.memory_space<vmem>>, vector<1x8xf32>
      tpu.vector_store %arg4[%c0_18, %c0_19], %19 {strides = array<i32>} : memref<1x8xf32, #tpu.memory_space<vmem>>, vector<1x8xf32>,
    } else {
    }
    %c0 = arith.constant 0 : index
    %c0_1 = arith.constant 0 : index
    %3 = vector.load %arg1[%c0, %c0_1] : memref<256x4xf32, #tpu.memory_space<vmem>>, vector<256x4xf32>
    %c0_2 = arith.constant 0 : index
    %c0_3 = arith.constant 0 : index
    %4 = vector.load %arg2[%c0_2, %c0_3] : memref<4x8xf32, #tpu.memory_space<vmem>>, vector<4x8xf32>
    %cst = arith.constant dense<0.000000e+00> : vector<256x8xf32>
    %5 = tpu.matmul %3, %4, %cst {dimension_numbers = #tpu.dot_dimension_numbers<[1], [0], [0], [1], [0, 0, 1, 1], [], []>} : vector<256x4xf32>, vector<4x8xf32>, vector<256x8xf32> -> vector<256x8xf32>
    %c0_4 = arith.constant 0 : index
    %c0_5 = arith.constant 0 : index
    %6 = vector.load %arg3[%c0_4, %c0_5] : memref<1x8xf32, #tpu.memory_space<vmem>>, vector<1x8xf32>
    %cst_6 = arith.constant dense<0.000000e+00> : vector<8xf32>
    %7 = vector.multi_reduction <add>, %5, %cst_6 [0] : vector<256x8xf32> to vector<8xf32>
    %8 = vector.shape_cast %7 : vector<8xf32> to vector<1x8xf32>
    %9 = arith.addf %6, %8 : vector<1x8xf32>
    %c0_7 = arith.constant 0 : index
    %c0_8 = arith.constant 0 : index
    %10 = vector.load %arg3[%c0_7, %c0_8] : memref<1x8xf32, #tpu.memory_space<vmem>>, vector<1x8xf32>
    tpu.vector_store %arg3[%c0_7, %c0_8], %9 {strides = array<i32>} : memref<1x8xf32, #tpu.memory_space<vmem>>, vector<1x8xf32>,
    %c0_9 = arith.constant 0 : index
    %c0_10 = arith.constant 0 : index
    %11 = vector.load %arg4[%c0_9, %c0_10] : memref<1x8xf32, #tpu.memory_space<vmem>>, vector<1x8xf32>
    %12 = arith.mulf %5, %5 : vector<256x8xf32>
    %cst_11 = arith.constant dense<0.000000e+00> : vector<8xf32>
    %13 = vector.multi_reduction <add>, %12, %cst_11 [0] : vector<256x8xf32> to vector<8xf32>
    %14 = vector.shape_cast %13 : vector<8xf32> to vector<1x8xf32>
    %15 = arith.addf %11, %14 : vector<1x8xf32>
    %c0_12 = arith.constant 0 : index
    %c0_13 = arith.constant 0 : index
    %16 = vector.load %arg4[%c0_12, %c0_13] : memref<1x8xf32, #tpu.memory_space<vmem>>, vector<1x8xf32>
    tpu.vector_store %arg4[%c0_12, %c0_13], %15 {strides = array<i32>} : memref<1x8xf32, #tpu.memory_space<vmem>>, vector<1x8xf32>,
    return
  }
  func.func @transform_0(%arg0: i32) -> (i32, i32) {
    %c0_i32 = arith.constant 0 : i32
    %c0_i32_0 = arith.constant 0 : i32
    return %arg0, %c0_i32 : i32, i32
  }
  func.func @transform_1(%arg0: i32) -> (i32, i32) {
    %c0_i32 = arith.constant 0 : i32
    %c0_i32_0 = arith.constant 0 : i32
    %c0_i32_1 = arith.constant 0 : i32
    return %c0_i32, %c0_i32_0 : i32, i32
  }
  func.func @transform_2(%arg0: i32) -> (i32, i32) {
    %c0_i32 = arith.constant 0 : i32
    %c0_i32_0 = arith.constant 0 : i32
    %c0_i32_1 = arith.constant 0 : i32
    return %c0_i32, %c0_i32_0 : i32, i32
  }
  func.func @transform_3(%arg0: i32) -> (i32, i32) {
    %c0_i32 = arith.constant 0 : i32
    %c0_i32_0 = arith.constant 0 : i32
    %c0_i32_1 = arith.constant 0 : i32
    return %c0_i32, %c0_i32_0 : i32, i32
  }
}

</mosaic_0001>

<bundles_post_ra>
// kernel: tpu_custom_call.1
= control target key start
LH: loop header
LB: loop body
LE: loop exit
PB: predicated region body
PF: predicated region fallthrough
CT: control target
= control target key end

     0   :  { %9 = vsyncpa [#allocation3], 0  ;;  %s1301_s0 = inlined_call_operand.vmem [shape: f32[512,4], index: 0, kind: input, shape index: {}]   ;;  %s1302_s1 = inlined_call_operand.vmem [shape: f32[4,8], index: 1, kind: input, shape index: {}]   ;;  %s1303_s2 = inlined_call_operand.hbm [shape: f32[1,8], index: 2, kind: output, shape index: {0}]   ;;  %s1304_s3 = inlined_call_operand.hbm [shape: f32[1,8], index: 3, kind: output, shape index: {1}]  }
   0x1   :  { %10 = vsyncpa [#allocation5], 0  ;;  %s1015_s12 = smov 0  }
   0x2 LB: > { %s1021_s13 = sadd.s32 4294967295, %s990_s12   ;;  %p773_p0 = scmp.ge.s32.totalorder %s990_s12, 1  ;;  %s990_s12 = sphi %s1015_s12, %s16_s12  }
   0x3   : > { %p133_p1 = scmp.lt.s32.totalorder %s990_s12, 3 }
   0x5   : > { %p134_p2 = pnand %p773_p0, %p133_p1 }
   0x6   : > { %s774_s14 = sshll.u32 (!%p134_p2), %s1021_s13, 5  ;;  %p776_p4 = scmp.ne.s32.totalorder (!%p134_p2), %s1021_s13, 0 }
   0x7   : > { %137 = sbr.rel (%p134_p2) target bundleno = 354 (0x162), region = 28  ;;  %p153_p3 = scmp.lt.s32.totalorder (!%p134_p2), %s774_s14, 63 }
   0xe   : > { %s1306_s14 = smov (!%p153_p3, %s774_s14), 63  ;;  %161 = sbr.rel (%p776_p4) target bundleno = 21 (0x15), region = 32 }
   0xf   : > { %s775_s15 = sshll.u32 %s1306_s14, 3  ;;  %vm162_vm0 = vcmask (!%p776_p4), 57344   ;;  %v992_v0 = vmov (!%p776_p4), 0.0  }
  0x10   : > { %s1029_s18 = scalar_lea.vmem %s1301_s0, %s775_s15  ;;  %163 = vst.msk [vmem:[#allocation2] sm:$0x1] (!%p776_p4), %vm162_vm0, %v992_v0  ;;  %164 = vst.msk [vmem:[#allocation4] sm:$0x1] (!%p776_p4), %vm162_vm0, %v992_v0 }
  0x15 PF: > { %v197_v1 = vld [vmem:[%s1302_s1] sm:$0xf]  ;;  %vm295_vm1 = vcmask 1043456   ;;  %vm198_vm2 = vcmask 31744   ;;  %v166_v3 = vld [vmem:[%s1029_s18 + $0x8] sm:$0xff]  ;;  %v167_v4 = vld [vmem:[%s1029_s18 + $0x10] sm:$0xff] }
  0x16   : > { %v165_v2 = vld [vmem:[%s1029_s18] sm:$0xff]  ;;  %849 = vmatprep.subr.msk.mxu0 %vm295_vm1, %v197_v1  ;;  %899 = vmatprep.subr.msk.mxu1 %vm295_vm1, %v197_v1  ;;  %v168_v5 = vld [vmem:[%s1029_s18 + $0x18] sm:$0xff]  ;;  %v182_v8 = vld [vmem:[%s1029_s18 + $0x88] sm:$0xff]  ;;  %vm525_vm3 = vcmask 64512   ;;  %s993_s21 = smov [#allocation2]   ;;  %vm596_vm4 = vcmask 57344  }
  0x17   : > { %851 = vmatprep.mubr.msk.f32.mxu0 %vm198_vm2, %v165_v2  ;;  %850 = vmatpush3.msk.msra.mxu0 %vm295_vm1, %v197_v1  ;;  %v169_v6 = vld [vmem:[%s1029_s18 + $0x20] sm:$0xff]  ;;  %v183_v9 = vld [vmem:[%s1029_s18 + $0x90] sm:$0xff]  ;;  %v170_v10 = vld [vmem:[%s1029_s18 + $0x28] sm:$0xff]  ;;  %s709_s22 = sshll.u32 %s993_s21, 4  ;;  %p909_p5 = scmp.eq.s32.totalorder %s1021_s13, 1  ;;  %s710_s22 = int_to_ptr.vmem [resolvable:$true] %s709_s22 }
  0x18   : > { %852 = vmatmul.mubr.msk.f32.vlgmr.msra.gmra.mrb[0].mxu0 %vm198_vm2, %v166_v3  ;;  %900 = vmatpush3.msk.msra.mxu1 %vm295_vm1, %v197_v1  ;;  %v181_v7 = vld [vmem:[%s1029_s18 + $0x80] sm:$0xff]  ;;  %v184_v11 = vld [vmem:[%s1029_s18 + $0x98] sm:$0xff]  ;;  %v171_v12 = vld [vmem:[%s1029_s18 + $0x30] sm:$0xff]  ;;  %s994_s23 = smov [#allocation4]   ;;  %s924_s25 = scalar_lea.vmem %s710_s22, 16 }
  0x19   : > { %854 = vmatprep.mubr.msk.f32.mxu0 %vm198_vm2, %v167_v4  ;;  %875 = vmatprep.mubr.msk.f32.mxu1 %vm198_vm2, %v181_v7  ;;  %v185_v13 = vld [vmem:[%s1029_s18 + $0xa0] sm:$0xff]  ;;  %v172_v14 = vld [vmem:[%s1029_s18 + $0x38] sm:$0xff]  ;;  %v186_v15 = vld [vmem:[%s1029_s18 + $0xa8] sm:$0xff]  ;;  %s720_s24 = sshll.u32 %s994_s23, 4  ;;  %p925_p6 = scmp.ne.s32.totalorder %s710_s22, %s924_s25  ;;  %s1245_s24 = int_to_ptr.vmem [resolvable:$true] %s720_s24 }
  0x1a   : > { %876 = vmatmul.mubr.msk.f32.vlgmr.msra.gmra.mrb[0].mxu1 %vm198_vm2, %v182_v8  ;;  %v173_v16 = vld [vmem:[%s1029_s18 + $0x40] sm:$0xff]  ;;  %v187_v17 = vld [vmem:[%s1029_s18 + $0xb0] sm:$0xff]  ;;  %v174_v18 = vld [vmem:[%s1029_s18 + $0x48] sm:$0xff]  ;;  %s930_s26 = scalar_lea.vmem %s710_s22, 32  ;;  %p931_p9 = scmp.lt.s32.totalorder %s710_s22, %s710_s22 }
  0x1b   : > { %878 = vmatprep.mubr.msk.f32.mxu1 %vm198_vm2, %v183_v9  ;;  %v188_v19 = vld [vmem:[%s1029_s18 + $0xb8] sm:$0xff]  ;;  %v175_v20 = vld [vmem:[%s1029_s18 + $0x50] sm:$0xff]  ;;  %v189_v21 = vld [vmem:[%s1029_s18 + $0xc0] sm:$0xff]  ;;  %p926_p7 = pnand %p925_p6, %p909_p5  ;;  %p932_p10 = scmp.lt.s32.totalorder %s930_s26, %s924_s25 }
  0x1c   : > { %855 = vmatmul.mubr.msk.f32.gmra.mrb[2].mxu0 %vm198_vm2, %v168_v5  ;;  %v176_v22 = vld [vmem:[%s1029_s18 + $0x58] sm:$0xff]  ;;  %v190_v23 = vld [vmem:[%s1029_s18 + $0xc8] sm:$0xff]  ;;  %v177_v24 = vld [vmem:[%s1029_s18 + $0x60] sm:$0xff] }
  0x1d   : > { %857 = vmatprep.mubr.msk.f32.mxu0 %vm198_vm2, %v169_v6  ;;  %v191_v25 = vld [vmem:[%s1029_s18 + $0xd0] sm:$0xff]  ;;  %v178_v26 = vld [vmem:[%s1029_s18 + $0x68] sm:$0xff]  ;;  %v192_v27 = vld [vmem:[%s1029_s18 + $0xd8] sm:$0xff]  ;;  %p927_p8 = pneg %p926_p7  ;;  %p933_p11 = por %p932_p10, %p931_p9 }
  0x1e   : > { %879 = vmatmul.mubr.msk.f32.gmra.mrb[2].mxu1 %vm198_vm2, %v184_v11  ;;  %v179_v28 = vld [vmem:[%s1029_s18 + $0x70] sm:$0xff]  ;;  %v193_v29 = vld [vmem:[%s1029_s18 + $0xe0] sm:$0xff]  ;;  %v180_v30 = vld [vmem:[%s1029_s18 + $0x78] sm:$0xff] }
  0x1f   : > { %881 = vmatprep.mubr.msk.f32.mxu1 %vm198_vm2, %v185_v13  ;;  %v194_v31 = vld [vmem:[%s1029_s18 + $0xe8] sm:$0xff]  ;;  %v195_v32 = vld [vmem:[%s1029_s18 + $0xf0] sm:$0xff]  ;;  %v196_v33 = vld [vmem:[%s1029_s18 + $0xf8] sm:$0xff]  ;;  %p934_p12 = pnand %p933_p11, %p927_p8 }
  0x20   : > { %858 = vmatmul.mubr.msk.f32.gmra.mrb[4].mxu0 %vm198_vm2, %v170_v10 }
  0x21   : > { %860 = vmatprep.mubr.msk.f32.mxu0 %vm198_vm2, %v171_v12 }
  0x22   : > { %882 = vmatmul.mubr.msk.f32.gmra.mrb[4].mxu1 %vm198_vm2, %v186_v15 }
  0x23   : > { %884 = vmatprep.mubr.msk.f32.mxu1 %vm198_vm2, %v187_v17 }
  0x24   : > { %861 = vmatmul.mubr.msk.f32.gmra.mrb[6].mxu0 %vm198_vm2, %v172_v14 }
  0x25   : > { %863 = vmatprep.mubr.msk.f32.mxu0 %vm198_vm2, %v173_v16 }
  0x26   : > { %885 = vmatmul.mubr.msk.f32.gmra.mrb[6].mxu1 %vm198_vm2, %v188_v19 }
  0x27   : > { %887 = vmatprep.mubr.msk.f32.mxu1 %vm198_vm2, %v189_v21 }
  0x28   : > { %864 = vmatmul.mubr.msk.f32.gmra.mrb[8].mxu0 %vm198_vm2, %v174_v18 }
  0x29   : > { %866 = vmatprep.mubr.msk.f32.mxu0 %vm198_vm2, %v175_v20 }
  0x2a   : > { %888 = vmatmul.mubr.msk.f32.gmra.mrb[8].mxu1 %vm198_vm2, %v190_v23 }
  0x2b   : > { %890 = vmatprep.mubr.msk.f32.mxu1 %vm198_vm2, %v191_v25 }
  0x2c   : > { %867 = vmatmul.mubr.msk.f32.gmra.mrb[10].mxu0 %vm198_vm2, %v176_v22 }
  0x2d   : > { %869 = vmatprep.mubr.msk.f32.mxu0 %vm198_vm2, %v177_v24 }
  0x2e   : > { %891 = vmatmul.mubr.msk.f32.gmra.mrb[10].mxu1 %vm198_vm2, %v192_v27 }
  0x2f   : > { %893 = vmatprep.mubr.msk.f32.mxu1 %vm198_vm2, %v193_v29 }
  0x30   : > { %870 = vmatmul.mubr.msk.f32.gmra.mrb[12].mxu0 %vm198_vm2, %v178_v26 }
  0x31   : > { %872 = vmatprep.mubr.msk.f32.mxu0 %vm198_vm2, %v179_v28 }
  0x32   : > { %894 = vmatmul.mubr.msk.f32.gmra.mrb[12].mxu1 %vm198_vm2, %v194_v31 }
  0x33   : > { %896 = vmatprep.mubr.msk.f32.mxu1 %vm198_vm2, %v195_v32 }
  0x34   : > { %873 = vmatmul.mubr.msk.f32.gmra.mrb[14].mxu0 %vm198_vm2, %v180_v30 }
  0x36   : > { %897 = vmatmul.mubr.msk.f32.gmra.mrb[14].mxu1 %vm198_vm2, %v196_v33 }
  0xeb   : > { %v853_v34 = vpop.f32.mrb[0].mxu0 }
  0xec   : > { %v527_v35 = vsel %vm525_vm3, %v853_v34, 0.0  ;;  %v600_v36 = vmul.f32 %v853_v34, %v853_v34  ;;  %v365_v37 = vpop.f32.mrb[1].mxu0 }
  0xed   : > { %v526_v38 = vsel %vm525_vm3, %v365_v37, 0.0  ;;  %v599_v39 = vmul.f32 %v365_v37, %v365_v37  ;;  %v1103_v44 = vpop.f32.mrb[0].mxu1 }
  0xee   : > { %v632_v40 = vsel %vm525_vm3, %v600_v36, 0.0  ;;  %v528_v41 = vadd.f32 %v527_v35, %v526_v38  ;;  %v1105_v47 = vpop.f32.mrb[1].mxu1 }
  0xef   : > { %v631_v42 = vsel %vm525_vm3, %v599_v39, 0.0  ;;  %v856_v43 = vpop.f32.mrb[2].mxu0 }
  0xf0   : > { %v633_v45 = vadd.f32 %v632_v40, %v631_v42  ;;  %v375_v46 = vpop.f32.mrb[3].mxu0  ;;  %v602_v48 = vmul.f32 %v856_v43, %v856_v43  ;;  %v531_v52 = vsel %vm525_vm3, %v856_v43, 0.0 }
  0xf1   : > { %v529_v49 = vsel %vm525_vm3, %v375_v46, 0.0  ;;  %v601_v50 = vmul.f32 %v375_v46, %v375_v46  ;;  %v1110_v55 = vpop.f32.mrb[2].mxu1 }
  0xf2   : > { %v530_v51 = vadd.f32 %v529_v49, %v528_v41  ;;  %v1112_v59 = vpop.f32.mrb[3].mxu1  ;;  %v636_v60 = vsel %vm525_vm3, %v602_v48, 0.0 }
  0xf3   : > { %v634_v53 = vsel %vm525_vm3, %v601_v50, 0.0  ;;  %v859_v54 = vpop.f32.mrb[4].mxu0 }
  0xf4   : > { %v635_v56 = vadd.f32 %v634_v53, %v633_v45  ;;  %v385_v57 = vpop.f32.mrb[5].mxu0  ;;  %v532_v58 = vadd.f32 %v531_v52, %v530_v51  ;;  %v604_v61 = vmul.f32 %v859_v54, %v859_v54  ;;  %v535_v2 = vsel %vm525_vm3, %v859_v54, 0.0 }
  0xf5   : > { %v533_v62 = vsel %vm525_vm3, %v385_v57, 0.0  ;;  %v603_v63 = vmul.f32 %v385_v57, %v385_v57  ;;  %v1118_v5 = vpop.f32.mrb[4].mxu1 }
  0xf6   : > { %v534_v0 = vadd.f32 %v533_v62, %v532_v58  ;;  %v637_v1 = vadd.f32 %v636_v60, %v635_v56  ;;  %v1120_v9 = vpop.f32.mrb[5].mxu1  ;;  %v640_v10 = vsel %vm525_vm3, %v604_v61, 0.0 }
  0xf7   : > { %v638_v3 = vsel %vm525_vm3, %v603_v63, 0.0  ;;  %v862_v4 = vpop.f32.mrb[6].mxu0 }
  0xf8   : > { %v639_v6 = vadd.f32 %v638_v3, %v637_v1  ;;  %v395_v7 = vpop.f32.mrb[7].mxu0  ;;  %v536_v8 = vadd.f32 %v535_v2, %v534_v0  ;;  %v606_v11 = vmul.f32 %v862_v4, %v862_v4  ;;  %v539_v16 = vsel %vm525_vm3, %v862_v4, 0.0 }
  0xf9   : > { %v537_v12 = vsel %vm525_vm3, %v395_v7, 0.0  ;;  %v605_v13 = vmul.f32 %v395_v7, %v395_v7  ;;  %v1126_v19 = vpop.f32.mrb[6].mxu1 }
  0xfa   : > { %v538_v14 = vadd.f32 %v537_v12, %v536_v8  ;;  %v641_v15 = vadd.f32 %v640_v10, %v639_v6  ;;  %v1128_v23 = vpop.f32.mrb[7].mxu1  ;;  %v644_v24 = vsel %vm525_vm3, %v606_v11, 0.0  ;;  %v615_v6 = vmul.f32 %v1105_v47, %v1105_v47 }
  0xfb   : > { %v642_v17 = vsel %vm525_vm3, %v605_v13, 0.0  ;;  %v865_v18 = vpop.f32.mrb[8].mxu0 }
  0xfc   : > { %v643_v20 = vadd.f32 %v642_v17, %v641_v15  ;;  %v405_v21 = vpop.f32.mrb[9].mxu0  ;;  %v540_v22 = vadd.f32 %v539_v16, %v538_v14  ;;  %v608_v25 = vmul.f32 %v865_v18, %v865_v18  ;;  %v543_v30 = vsel %vm525_vm3, %v865_v18, 0.0 }
  0xfd   : > { %v541_v26 = vsel %vm525_vm3, %v405_v21, 0.0  ;;  %v607_v27 = vmul.f32 %v405_v21, %v405_v21  ;;  %v1134_v33 = vpop.f32.mrb[8].mxu1  ;;  %v557_v17 = vsel %vm525_vm3, %v1105_v47, 0.0  ;;  %v559_v47 = vsel %vm525_vm3, %v1103_v44, 0.0 }
  0xfe   : > { %v542_v28 = vadd.f32 %v541_v26, %v540_v22  ;;  %v645_v29 = vadd.f32 %v644_v24, %v643_v20  ;;  %v1136_v37 = vpop.f32.mrb[9].mxu1  ;;  %v648_v38 = vsel %vm525_vm3, %v608_v25, 0.0  ;;  %v616_v25 = vmul.f32 %v1103_v44, %v1103_v44 }
  0xff   : > { %v646_v31 = vsel %vm525_vm3, %v607_v27, 0.0  ;;  %v868_v32 = vpop.f32.mrb[10].mxu0  ;;  %v662_v26 = vsel %vm525_vm3, %v615_v6, 0.0  ;;  %v617_v27 = vmul.f32 %v1112_v59, %v1112_v59  ;;  %v563_v44 = vsel %vm525_vm3, %v1110_v55, 0.0 }
 0x100   : > { %v647_v34 = vadd.f32 %v646_v31, %v645_v29  ;;  %v415_v35 = vpop.f32.mrb[11].mxu0  ;;  %v544_v36 = vadd.f32 %v543_v30, %v542_v28  ;;  %v610_v39 = vmul.f32 %v868_v32, %v868_v32  ;;  %v547_v45 = vsel %vm525_vm3, %v868_v32, 0.0 }
 0x101   : > { %v545_v40 = vsel %vm525_vm3, %v415_v35, 0.0  ;;  %v609_v41 = vmul.f32 %v415_v35, %v415_v35  ;;  %v1142_v49 = vpop.f32.mrb[10].mxu1  ;;  %v561_v30 = vsel %vm525_vm3, %v1112_v59, 0.0  ;;  %v618_v35 = vmul.f32 %v1110_v55, %v1110_v55 }
 0x102   : > { %v546_v42 = vadd.f32 %v545_v40, %v544_v36  ;;  %v649_v43 = vadd.f32 %v648_v38, %v647_v34  ;;  %v1144_v53 = vpop.f32.mrb[11].mxu1  ;;  %v652_v54 = vsel %vm525_vm3, %v610_v39, 0.0  ;;  %v664_v34 = vsel %vm525_vm3, %v616_v25, 0.0 }
 0x103   : > { %v650_v46 = vsel %vm525_vm3, %v609_v41, 0.0  ;;  %v871_v48 = vpop.f32.mrb[12].mxu0  ;;  %v666_v36 = vsel %vm525_vm3, %v617_v27, 0.0  ;;  %v619_v38 = vmul.f32 %v1120_v9, %v1120_v9  ;;  %v565_v59 = vsel %vm525_vm3, %v1120_v9, 0.0 }
 0x104   : > { %v651_v50 = vadd.f32 %v650_v46, %v649_v43  ;;  %v425_v51 = vpop.f32.mrb[13].mxu0  ;;  %v548_v52 = vadd.f32 %v547_v45, %v546_v42  ;;  %v612_v56 = vmul.f32 %v871_v48, %v871_v48  ;;  %v551_v62 = vsel %vm525_vm3, %v871_v48, 0.0 }
 0x105   : > { %v549_v57 = vsel %vm525_vm3, %v425_v51, 0.0  ;;  %v611_v58 = vmul.f32 %v425_v51, %v425_v51  ;;  %v1150_v1 = vpop.f32.mrb[12].mxu1  ;;  %v668_v43 = vsel %vm525_vm3, %v618_v35, 0.0  ;;  %v620_v45 = vmul.f32 %v1118_v5, %v1118_v5 }
 0x106   : > { %v550_v60 = vadd.f32 %v549_v57, %v548_v52  ;;  %v653_v61 = vadd.f32 %v652_v54, %v651_v50  ;;  %v1154_v7 = vpop.f32.mrb[13].mxu1  ;;  %v656_v8 = vsel %vm525_vm3, %v612_v56, 0.0  ;;  %v670_v46 = vsel %vm525_vm3, %v619_v38, 0.0 }
 0x107   : > { %v654_v63 = vsel %vm525_vm3, %v611_v58, 0.0  ;;  %v874_v0 = vpop.f32.mrb[14].mxu0  ;;  %v621_v48 = vmul.f32 %v1128_v23, %v1128_v23  ;;  %v567_v55 = vsel %vm525_vm3, %v1118_v5, 0.0  ;;  %v569_v9 = vsel %vm525_vm3, %v1128_v23, 0.0 }
 0x108   : > { %v655_v2 = vadd.f32 %v654_v63, %v653_v61  ;;  %v435_v3 = vpop.f32.mrb[15].mxu0  ;;  %v552_v4 = vadd.f32 %v551_v62, %v550_v60  ;;  %v614_v10 = vmul.f32 %v874_v0, %v874_v0  ;;  %v555_v15 = vsel %vm525_vm3, %v874_v0, 0.0 }
 0x109   : > { %v553_v11 = vsel %vm525_vm3, %v435_v3, 0.0  ;;  %v613_v12 = vmul.f32 %v435_v3, %v435_v3  ;;  %v1162_v18 = vpop.f32.mrb[14].mxu1  ;;  %v672_v56 = vsel %vm525_vm3, %v620_v45, 0.0  ;;  %v622_v57 = vmul.f32 %v1126_v19, %v1126_v19 }
 0x10a   : > { %v554_v13 = vadd.f32 %v553_v11, %v552_v4  ;;  %v657_v14 = vadd.f32 %v656_v8, %v655_v2  ;;  %v1164_v22 = vpop.f32.mrb[15].mxu1  ;;  %v660_v24 = vsel %vm525_vm3, %v614_v10, 0.0  ;;  %v674_v58 = vsel %vm525_vm3, %v621_v48, 0.0 }
 0x10b   : > { %v658_v16 = vsel %vm525_vm3, %v613_v12, 0.0  ;;  %v623_v60 = vmul.f32 %v1136_v37, %v1136_v37  ;;  %v571_v5 = vsel %vm525_vm3, %v1126_v19, 0.0  ;;  %v573_v23 = vsel %vm525_vm3, %v1136_v37, 0.0 }
 0x10c   : > { %v556_v20 = vadd.f32 %v555_v15, %v554_v13  ;;  %v659_v21 = vadd.f32 %v658_v16, %v657_v14  ;;  %v676_v2 = vsel %vm525_vm3, %v622_v57, 0.0  ;;  %v624_v3 = vmul.f32 %v1134_v33, %v1134_v33 }
 0x10d   : > { %v678_v4 = vsel %vm525_vm3, %v623_v60, 0.0  ;;  %v625_v6 = vmul.f32 %v1144_v53, %v1144_v53  ;;  %v575_v19 = vsel %vm525_vm3, %v1134_v33, 0.0  ;;  %v577_v37 = vsel %vm525_vm3, %v1144_v53, 0.0 }
 0x10e   : > { %v661_v28 = vadd.f32 %v660_v24, %v659_v21  ;;  %v558_v29 = vadd.f32 %v557_v17, %v556_v20  ;;  %v680_v13 = vsel %vm525_vm3, %v624_v3, 0.0  ;;  %v626_v14 = vmul.f32 %v1142_v49, %v1142_v49 }
 0x10f   : > { %v682_v15 = vsel %vm525_vm3, %v625_v6, 0.0  ;;  %v627_v16 = vmul.f32 %v1154_v7, %v1154_v7  ;;  %v579_v33 = vsel %vm525_vm3, %v1142_v49, 0.0  ;;  %v581_v53 = vsel %vm525_vm3, %v1154_v7, 0.0 }
 0x110   : > { %v663_v31 = vadd.f32 %v662_v26, %v661_v28  ;;  %v560_v32 = vadd.f32 %v559_v47, %v558_v29  ;;  %v684_v25 = vsel %vm525_vm3, %v626_v14, 0.0  ;;  %v628_v26 = vmul.f32 %v1150_v1, %v1150_v1 }
 0x111   : > { %v686_v27 = vsel %vm525_vm3, %v627_v16, 0.0  ;;  %v629_v28 = vmul.f32 %v1164_v22, %v1164_v22  ;;  %v583_v49 = vsel %vm525_vm3, %v1150_v1, 0.0  ;;  %v585_v7 = vsel %vm525_vm3, %v1164_v22, 0.0 }
 0x112   : > { %v562_v39 = vadd.f32 %v561_v30, %v560_v32  ;;  %v665_v40 = vadd.f32 %v664_v34, %v663_v31  ;;  %v688_v32 = vsel %vm525_vm3, %v628_v26, 0.0  ;;  %v630_v34 = vmul.f32 %v1162_v18, %v1162_v18 }
 0x113   : > { %v690_v35 = vsel %vm525_vm3, %v629_v28, 0.0 }
 0x114   : > { %v667_v41 = vadd.f32 %v666_v36, %v665_v40  ;;  %v564_v42 = vadd.f32 %v563_v44, %v562_v39  ;;  %v587_v39 = vsel %vm525_vm3, %v1162_v18, 0.0  ;;  %v692_v1 = vsel %vm525_vm3, %v630_v34, 0.0 }
 0x116   : > { %v566_v50 = vadd.f32 %v565_v59, %v564_v42  ;;  %v669_v51 = vadd.f32 %v668_v43, %v667_v41 }
 0x118   : > { %v671_v52 = vadd.f32 %v670_v46, %v669_v51  ;;  %v568_v54 = vadd.f32 %v567_v55, %v566_v50  ;;  %v524_v55 = vld [vmem:[#allocation2] sm:$0x1] }
 0x11a   : > { %v570_v61 = vadd.f32 %v569_v9, %v568_v54  ;;  %v673_v62 = vadd.f32 %v672_v56, %v671_v52  ;;  %v598_v52 = vld [vmem:[#allocation4] sm:$0x1] }
 0x11c   : > { %v675_v63 = vadd.f32 %v674_v58, %v673_v62  ;;  %v572_v0 = vadd.f32 %v571_v5, %v570_v61 }
 0x11e   : > { %v574_v8 = vadd.f32 %v573_v23, %v572_v0  ;;  %v677_v10 = vadd.f32 %v676_v2, %v675_v63 }
 0x120   : > { %v679_v11 = vadd.f32 %v678_v4, %v677_v10  ;;  %v576_v12 = vadd.f32 %v575_v19, %v574_v8 }
 0x122   : > { %v578_v17 = vadd.f32 %v577_v37, %v576_v12  ;;  %v681_v20 = vadd.f32 %v680_v13, %v679_v11 }
 0x124   : > { %v683_v21 = vadd.f32 %v682_v15, %v681_v20  ;;  %v580_v24 = vadd.f32 %v579_v33, %v578_v17 }
 0x126   : > { %v582_v29 = vadd.f32 %v581_v53, %v580_v24  ;;  %v685_v47 = vadd.f32 %v684_v25, %v683_v21 }
 0x128   : > { %v687_v30 = vadd.f32 %v686_v27, %v685_v47  ;;  %v584_v31 = vadd.f32 %v583_v49, %v582_v29 }
 0x12a   : > { %v586_v36 = vadd.f32 %v585_v7, %v584_v31  ;;  %v689_v38 = vadd.f32 %v688_v32, %v687_v30 }
 0x12c   : > { %v588_v40 = vadd.f32 %v587_v39, %v586_v36  ;;  %v691_v44 = vadd.f32 %v690_v35, %v689_v38 }
 0x12e   : > { %v589_v59 = vrot.slane %v588_v40, 4  ;;  %v693_v22 = vadd.f32 %v692_v1, %v691_v44 }
 0x130   : > { %v590_v41 = vadd.f32 %v589_v59, %v588_v40  ;;  %v694_v42 = vrot.slane %v693_v22, 4 }
 0x132   : > { %v591_v43 = vrot.slane %v590_v41, 2  ;;  %v695_v45 = vadd.f32 %v694_v42, %v693_v22 }
 0x134   : > { %v592_v46 = vadd.f32 %v591_v43, %v590_v41  ;;  %v696_v48 = vrot.slane %v695_v45, 2 }
 0x136   : > { %v593_v50 = vrot.slane %v592_v46, 1  ;;  %v697_v51 = vadd.f32 %v696_v48, %v695_v45 }
 0x138   : > { %v594_v18 = vadd.f32 %v593_v50, %v592_v46  ;;  %v698_v9 = vrot.slane %v697_v51, 1 }
 0x13a   : > { %v595_v54 = vadd.f32 %v594_v18, %v524_v55  ;;  %v699_v56 = vadd.f32 %v698_v9, %v697_v51 }
 0x13c   : > { %597 = vst.msk [vmem:[#allocation2] sm:$0x1] %vm596_vm4, %v595_v54  ;;  %v700_v57 = vadd.f32 %v699_v56, %v598_v52 }
 0x13d   : > { %937 = shalt.err (!%p934_p12)
}
 0x13e   : > { %s938_s29 = scalar_lea.hbm %s1303_s2, 16 }
 0x13f   : > { %p939_p13 = scmp.ne.s32.totalorder %s1303_s2, %s938_s29  ;;  %p944_p2 = scmp.lt.u32.totalorder %s938_s29, %s1303_s2 }
 0x141   : > { %p940_p0 = pnand %p939_p13, %p909_p5 }
 0x143   : > { %p941_p1 = pneg %p940_p0 }
 0x145   : > { %p946_p3 = pnand %p944_p2, %p941_p1 }
 0x147   : > { %949 = shalt.err (!%p946_p3)
}
 0x148   : > { %902 = dma.vmem_to_hbm [thread:$0]  (%p909_p5), %s710_s22, 16, %s1303_s2, [#allocation3]   ;;  %701 = vst.msk [vmem:[#allocation4] sm:$0x1] %vm596_vm4, %v700_v57 }
 0x149   : > { %s950_s9 = scalar_lea.vmem %s1245_s24, 16  ;;  %s956_s10 = scalar_lea.vmem %s1245_s24, 32 }
 0x14a   : > { %p951_p4 = scmp.ne.s32.totalorder %s1245_s24, %s950_s9  ;;  %p957_p8 = scmp.lt.s32.totalorder %s1245_s24, %s1245_s24 }
 0x14b   : > { %p958_p9 = scmp.lt.s32.totalorder %s956_s10, %s950_s9 }
 0x14c   : > { %p952_p6 = pnand %p951_p4, %p909_p5 }
 0x14d   : > { %p959_p10 = por %p958_p9, %p957_p8 }
 0x14e   : > { %p953_p7 = pneg %p952_p6 }
 0x150   : > { %p960_p11 = pnand %p959_p10, %p953_p7 }
 0x152   : > { %963 = shalt.err (!%p960_p11)
}
 0x153   : > { %s964_s15 = scalar_lea.hbm %s1304_s3, 16 }
 0x154   : > { %p965_p12 = scmp.ne.s32.totalorder %s1304_s3, %s964_s15  ;;  %p970_p1 = scmp.lt.u32.totalorder %s964_s15, %s1304_s3 }
 0x156   : > { %p966_p13 = pnand %p965_p12, %p909_p5 }
 0x158   : > { %p967_p0 = pneg %p966_p13 }
 0x15a   : > { %p972_p2 = pnand %p970_p1, %p967_p0 }
 0x15c   : > { %975 = shalt.err (!%p972_p2)
}
 0x15d   : > { %904 = dma.vmem_to_hbm [thread:$0]  (%p909_p5), %s1245_s24, 16, %s1304_s3, [#allocation5]  }
 0x15e   : > { %981 = dma.done.wait (%p909_p5), [#allocation3], 16  }
 0x15f   : > { %983 = vsyncadd (%p909_p5), [#allocation3], 4294967280 }
 0x160   : > { %985 = dma.done.wait (%p909_p5), [#allocation5], 16  }
 0x161   : > { %987 = vsyncadd (%p909_p5), [#allocation5], 4294967280 }
 0x162 PF: > { %s16_s12 = sadd.s32 1, %s990_s12  }
 0x163   : > { %p13_p3 = scmp.ge.s32.totalorder %s16_s12, 4  }
 0x165   :  { %15 = sbr.rel (!%p13_p3) target bundleno = 2 (0x2), region = 67 }
 0x16c   :  { %737 = vsyncpa [#allocation3], 1 }
 0x16d   :  { %739 = vsyncpa [#allocation3 + $0x1], 1 }
 0x16e   :  { %740 = vsyncpa [#allocation5], 1 }

</bundles_post_ra>
